<compile_context>
chip_gen: v7x
topology: tpu7x:2x2x1
jax: 0.10.0
libtpu: 0.0.40
codegen_flags: <defaults>
</compile_context>

<pallas_src>
import math
from functools import partial

import jax
import jax.numpy as jnp
from jax.experimental import pallas as pl
from jax.experimental.pallas import tpu as pltpu


# ----------------------------- kernels ------------------------------------ #

def _wscale4d_kernel(scale_ref, bias_ref, x_ref, o_ref):
    # scale_ref: SMEM (1,) f32; bias_ref: VMEM (bc, 1); x_ref/o_ref: VMEM (bn, bc, bw)
    s = scale_ref[0]
    o_ref[...] = (x_ref[...] * s + bias_ref[...][None, :, :]).astype(o_ref.dtype)


def _wscale2d_kernel(scale_ref, bias_ref, x_ref, o_ref):
    # scale_ref: SMEM (1,) f32; bias_ref: VMEM (1, bf); x_ref/o_ref: VMEM (bn, bf)
    s = scale_ref[0]
    o_ref[...] = (x_ref[...] * s + bias_ref[...]).astype(o_ref.dtype)


# ------------------------- block-size heuristics --------------------------- #

def _divisor_block(total, unit, cap):
    """Largest multiple of `unit` that is <= cap and divides `total`.

    Precondition: total % unit == 0 (or unit == 1)."""
    cap = max(unit, (cap // unit) * unit)
    b = min(total, cap)
    b = max(unit, (b // unit) * unit)
    while total % b:
        b -= unit
    return b


def _pick_block_4d(N, C, HW, itemsize, target_bytes):
    """Pick (bn, bc, bw) so each block is ~target_bytes, lane-dense, and
    respects the (8/16, 128) tiling constraint on the last two dims."""
    sub = 16 if itemsize == 2 else 8
    # Lane (last) dim: big multiple of 128 (HW is pre-padded to x128 if needed).
    if HW % 128 == 0:
        bw = _divisor_block(HW, 128, min(HW, 2048))
    else:
        bw = HW  # full-extent lane block (allowed when equal to array dim)
    # Channel (sublane) dim.
    rem = max(1, target_bytes // (bw * itemsize))
    if C % sub == 0:
        bc = _divisor_block(C, sub, min(C, max(sub, (rem // sub) * sub)))
    else:
        bc = C  # full extent
    # Leading batch dim: fill the remaining per-block budget.
    rem_n = max(1, target_bytes // (bc * bw * itemsize))
    bn = _divisor_block(N, 1, min(N, rem_n))
    return bn, bc, bw


# ------------------------------ wrappers ----------------------------------- #

_VMEM_LIMIT = 32 * 1024 * 1024  # plenty of headroom for ~2 MiB double-buffered blocks


def _wscale_forward_4d(x, scale, bias, block, target_bytes):
    N, C, H, W = x.shape
    hw = H * W
    if bias is None:
        bias = jnp.zeros((C,), dtype=x.dtype)

    x3 = x.reshape(N, C, hw)
    hw_pad = hw if hw % 128 == 0 else ((hw + 127) // 128) * 128
    if hw_pad != hw:
        x3 = jnp.pad(x3, ((0, 0), (0, 0), (0, hw_pad - hw)))

    bias2 = bias.astype(x.dtype).reshape(C, 1)
    scale1 = jnp.asarray(scale, jnp.float32).reshape(1)

    if block is None:
        bn, bc, bw = _pick_block_4d(N, C, hw_pad, x.dtype.itemsize, target_bytes)
    else:
        bn, bc, bw = block

    grid = (N // bn, C // bc, hw_pad // bw)

    out = pl.pallas_call(
        _wscale4d_kernel,
        out_shape=jax.ShapeDtypeStruct((N, C, hw_pad), x.dtype),
        grid_spec=pl.GridSpec(
            grid=grid,
            in_specs=[
                pl.BlockSpec(memory_space=pltpu.SMEM),                  # scale scalar
                pl.BlockSpec((bc, 1), lambda n, c, h: (c, 0)),          # per-channel bias
                pl.BlockSpec((bn, bc, bw), lambda n, c, h: (n, c, h)),  # x tiles
            ],
            out_specs=pl.BlockSpec((bn, bc, bw), lambda n, c, h: (n, c, h)),
        ),
        compiler_params=pltpu.CompilerParams(
            dimension_semantics=("parallel", "parallel", "parallel"),
            vmem_limit_bytes=_VMEM_LIMIT,
        ),
        input_output_aliases={2: 0},  # reuse the x slab for the output
    )(scale1, bias2, x3)

    if hw_pad != hw:
        out = out[:, :, :hw]
    return out.reshape(N, C, H, W)


def _wscale_forward_2d(x, scale, bias, block, target_bytes):
    N, F = x.shape
    if bias is None:
        bias = jnp.zeros((F,), dtype=x.dtype)

    bias2 = bias.astype(x.dtype).reshape(1, F)
    scale1 = jnp.asarray(scale, jnp.float32).reshape(1)

    itemsize = x.dtype.itemsize
    sub = 16 if itemsize == 2 else 8
    if block is None:
        bf = _divisor_block(F, 128, min(F, 2048)) if F % 128 == 0 else F
        if N % sub == 0:
            cap = max(sub, (max(1, target_bytes // (bf * itemsize)) // sub) * sub)
            bn = _divisor_block(N, sub, min(N, cap))
        else:
            bn = N
    else:
        bn, bf = block

    grid = (N // bn, F // bf)

    out = pl.pallas_call(
        _wscale2d_kernel,
        out_shape=jax.ShapeDtypeStruct((N, F), x.dtype),
        grid_spec=pl.GridSpec(
            grid=grid,
            in_specs=[
                pl.BlockSpec(memory_space=pltpu.SMEM),             # scale scalar
                pl.BlockSpec((1, bf), lambda n, f: (0, f)),        # per-feature bias
                pl.BlockSpec((bn, bf), lambda n, f: (n, f)),       # x tiles
            ],
            out_specs=pl.BlockSpec((bn, bf), lambda n, f: (n, f)),
        ),
        compiler_params=pltpu.CompilerParams(
            dimension_semantics=("parallel", "parallel"),
            vmem_limit_bytes=_VMEM_LIMIT,
        ),
        input_output_aliases={2: 0},
    )(scale1, bias2, x)
    return out


@partial(jax.jit, static_argnames=("block", "target_bytes"))
def wscale_forward(x, scale, bias=None, block=None, target_bytes=2 * 1024 * 1024):
    """y = x * scale + bias (broadcast over channel for 4D NCHW / feature for 2D)."""
    if x.ndim == 4:
        return _wscale_forward_4d(x, scale, bias, block, target_bytes)
    if x.ndim == 2:
        return _wscale_forward_2d(x, scale, bias, block, target_bytes)
    # TODO(synk): other ranks (e.g. 3D) are not used by the original module's callers.
    raise NotImplementedError("WScaleLayer Pallas kernel supports 2D and 4D inputs only")


# ------------------------------ test driver -------------------------------- #

def _ref_4d(x, scale, bias):
    return x * scale + bias.reshape(1, -1, 1, 1)


if __name__ == "__main__":
    key = jax.random.PRNGKey(0)
    kx, kb, kx2, kb2, kx3, kb3 = jax.random.split(key, 6)

    # "incoming" layer: Conv2d(in_channels=3, out_channels=4, kernel_size=3)
    # fan_in = 3 * 3 * 3 = 27; gain = calculate_gain('relu') = sqrt(2)
    in_channels, out_channels, ksize = 3, 4, 3
    fan_in = in_channels * ksize * ksize
    gain = math.sqrt(2.0)
    scale = jnp.float32(gain / math.sqrt(fan_in))

    bias = jax.random.normal(kb, (out_channels,), dtype=jnp.float32)
    x = jax.random.normal(kx, (2, out_channels, 16, 16), dtype=jnp.float32)

    # 1) 4D NCHW path (auto block selection).
    y = wscale_forward(x, scale, bias)
    jax.block_until_ready(y)
    y_ref = _ref_4d(x, scale, bias)
    assert jnp.allclose(y, y_ref, atol=1e-5, rtol=1e-5), "4D mismatch vs reference"

    # 2) Same input with an explicit multi-step grid (exercises DMA pipelining,
    #    batch + lane tiling, and bias block re-read across grid steps).
    y2 = wscale_forward(x, scale, bias, block=(1, 4, 128))  # grid = (2, 1, 2)
    jax.block_until_ready(y2)
    assert jnp.allclose(y2, y_ref, atol=1e-5, rtol=1e-5), "tiled 4D mismatch"

    # 3) Spatial size whose H*W is not a multiple of 128 (lane padding path).
    bias3 = jax.random.normal(kb2, (8,), dtype=jnp.float32)
    x3 = jax.random.normal(kx2, (2, 8, 18, 18), dtype=jnp.float32)
    y3 = wscale_forward(x3, scale, bias3)
    jax.block_until_ready(y3)
    assert jnp.allclose(y3, _ref_4d(x3, scale, bias3), atol=1e-5, rtol=1e-5), "pad mismatch"

    # 4) 2D (Linear-incoming) path: bias broadcasts along the feature (lane) axis.
    bias4 = jax.random.normal(kb3, (32,), dtype=jnp.float32)
    x4 = jax.random.normal(kx3, (8, 32), dtype=jnp.float32)
    y4 = wscale_forward(x4, scale, bias4)
    jax.block_until_ready(y4)
    assert jnp.allclose(y4, x4 * scale + bias4[None, :], atol=1e-5, rtol=1e-5), "2D mismatch"

    print("KERNEL_OK")
</pallas_src>

<mosaic_0001>
module attributes {stable_mosaic.version = 11 : i64} {
  func.func @_wscale4d_kernel(%arg0: i32, %arg1: i32, %arg2: i32, %arg3: memref<1xf32, #tpu.memory_space<smem>>, %arg4: memref<4x1xf32, #tpu.memory_space<vmem>>, %arg5: memref<2x4x256xf32, #tpu.memory_space<vmem>>, %arg6: memref<2x4x256xf32, #tpu.memory_space<vmem>>) attributes {dimension_semantics = [#tpu.dimension_semantics<parallel>, #tpu.dimension_semantics<parallel>, #tpu.dimension_semantics<parallel>], iteration_bounds = array<i64: 1, 1, 1>, scalar_prefetch = 0 : i64, scratch_operands = 0 : i64, tpu.core_type = #tpu.core_type<tc>, window_params = [{transform_indices = @transform_0, window_bounds = array<i64: 1>}, {transform_indices = @transform_1, window_bounds = array<i64: 4, 1>}, {transform_indices = @transform_2, window_bounds = array<i64: 2, 4, 256>}, {transform_indices = @transform_3, window_bounds = array<i64: 2, 4, 256>}]} {
    %c0 = arith.constant 0 : index
    %0 = memref.load %arg3[%c0] : memref<1xf32, #tpu.memory_space<smem>>
    %c0_0 = arith.constant 0 : index
    %c0_1 = arith.constant 0 : index
    %c0_2 = arith.constant 0 : index
    %1 = vector.load %arg5[%c0_0, %c0_1, %c0_2] : memref<2x4x256xf32, #tpu.memory_space<vmem>>, vector<2x4x256xf32>
    %2 = vector.broadcast %0 : f32 to vector<2x4x256xf32>
    %3 = arith.mulf %1, %2 : vector<2x4x256xf32>
    %c0_3 = arith.constant 0 : index
    %c0_4 = arith.constant 0 : index
    %4 = vector.load %arg4[%c0_3, %c0_4] : memref<4x1xf32, #tpu.memory_space<vmem>>, vector<4x1xf32>
    %5 = vector.shape_cast %4 : vector<4x1xf32> to vector<1x4x1xf32>
    %6 = vector.broadcast %5 : vector<1x4x1xf32> to vector<2x4x256xf32>
    %7 = arith.addf %3, %6 : vector<2x4x256xf32>
    %c0_5 = arith.constant 0 : index
    %c0_6 = arith.constant 0 : index
    %c0_7 = arith.constant 0 : index
    %8 = vector.load %arg6[%c0_5, %c0_6, %c0_7] : memref<2x4x256xf32, #tpu.memory_space<vmem>>, vector<2x4x256xf32>
    tpu.vector_store %arg6[%c0_5, %c0_6, %c0_7], %7 {strides = array<i32>} : memref<2x4x256xf32, #tpu.memory_space<vmem>>, vector<2x4x256xf32>,
    return
  }
  func.func @transform_0(%arg0: i32, %arg1: i32, %arg2: i32) -> i32 {
    %c0_i32 = arith.constant 0 : i32
    %c0_i32_0 = arith.constant 0 : i32
    return %c0_i32 : i32
  }
  func.func @transform_1(%arg0: i32, %arg1: i32, %arg2: i32) -> (i32, i32) {
    %c0_i32 = arith.constant 0 : i32
    %c0_i32_0 = arith.constant 0 : i32
    return %arg1, %c0_i32 : i32, i32
  }
  func.func @transform_2(%arg0: i32, %arg1: i32, %arg2: i32) -> (i32, i32, i32) {
    %c0_i32 = arith.constant 0 : i32
    return %arg0, %arg1, %arg2 : i32, i32, i32
  }
  func.func @transform_3(%arg0: i32, %arg1: i32, %arg2: i32) -> (i32, i32, i32) {
    %c0_i32 = arith.constant 0 : i32
    return %arg0, %arg1, %arg2 : i32, i32, i32
  }
}

</mosaic_0001>

<bundles_post_ra>
// kernel: wscale_forward.1
= control target key start
LH: loop header
LB: loop body
LE: loop exit
PB: predicated region body
PF: predicated region fallthrough
CT: control target
= control target key end

     0   :  { %v45_v0 = vmov 0   ;;  %v46_v2 = vmov 839922192   ;;  %v29_v4 = vlaneseq  ;;  %s85_s1 = inlined_call_operand.vmem [shape: f32[4,1], index: 1, kind: input, shape index: {}]   ;;  %s86_s2 = inlined_call_operand.vmem [shape: f32[2,4,256], index: 2, kind: input, shape index: {}, may-alias: {2,3}]   ;;  %s87_s0 = inlined_call_operand.<no memory space> [shape: f32[1], index: 0, kind: input, shape index: {}]   ;;  %s88_s3 = inlined_call_operand.vmem [shape: f32[2,4,256], index: 3, kind: output, shape index: {}, may-alias: {2,3}]  }
   0x1   :  { %44 = vset.pattern.permute.xlu0 %v45_v0  ;;  %v21_v1 = vld [vmem:[%s85_s1] sm:$0xf]  ;;  %v27_v3 = vunpack.c.l.s4 %v46_v2  ;;  %v17_v8 = vld [vmem:[%s86_s2 + $0x8] sm:$0xff]  ;;  %v18_v9 = vstv %s87_s0 }
   0x2   :  { %24 = vperm.xlu0 %44, %v21_v1   ;;  %v30_v6 = vshrl.u32 %v29_v4, 7  ;;  %v16_v7 = vld [vmem:[%s86_s2] sm:$0xff]  ;;  %v20_v12 = vmul.f32 %v18_v9, %v17_v8 }
   0x3   :  { %v28_v5 = vunpack.c.0.s8 %v27_v3  ;;  %v19_v11 = vmul.f32 %v18_v9, %v16_v7 }
   0x5   :  { %v31_v10 = vsub.s32 %v28_v5, %v30_v6 }
  0x81   :  { %v25_v13 = vpop.permute.xlu0 %24 }
  0x82   :  { %v32_v14 = vrot.slane %v25_v13, %v31_v10 }
  0x84   :  { %v34_v15 = vadd.f32 %v32_v14, %v19_v11  ;;  %v35_v16 = vadd.f32 %v32_v14, %v20_v12 }
  0x86   :  { %36 = vst [vmem:[%s88_s3] sm:$0xff] %v34_v15  ;;  %37 = vst [vmem:[%s88_s3 + $0x8] sm:$0xff] %v35_v16 }

</bundles_post_ra>
